<compile_context>
chip_gen: v7x
topology: tpu7x:2x2x1
jax: 0.10.0
libtpu: 0.0.40
codegen_flags: <defaults>
</compile_context>

<pallas_src>
import jax
import jax.numpy as jnp
from jax.experimental import pallas as pl
from jax.experimental.pallas import tpu as pltpu


# ----------------------------------------------------------------------------- kernel


def _linear_net_kernel(x_ref,
                       w0_ref, b0_ref,
                       w1_ref, b1_ref,
                       w2_ref, b2_ref,
                       w3_ref, b3_ref,
                       wl_ref, bl_ref,
                       o_ref):
    f32 = jnp.float32
    cdt = w0_ref.dtype  # matmul operand dtype (bf16 on the fast path, f32 otherwise)

    # In-kernel cast: x arrives as raw f32 rows straight from HBM (no separate XLA
    # pad/cast pass); the cast rides the VPU while the MXU is busy.
    x = x_ref[...].astype(cdt)

    # layer 0 (output NOT collected, matches `if i == 0: continue`)
    h = jnp.dot(x, w0_ref[...], preferred_element_type=f32) + b0_ref[...]

    # layers 1..3 collected via a running sum (halves live f32 temps vs h1+h2+h3)
    h = jnp.dot(h.astype(cdt), w1_ref[...], preferred_element_type=f32) + b1_ref[...]
    s = h
    h = jnp.dot(h.astype(cdt), w2_ref[...], preferred_element_type=f32) + b2_ref[...]
    s = s + h
    h = jnp.dot(h.astype(cdt), w3_ref[...], preferred_element_type=f32) + b3_ref[...]
    s = s + h

    # torch.mean(stack([h1,h2,h3]),0) @ Wl + bl == (h1+h2+h3) @ (Wl/3) + bl;
    # the 1/3 is folded into wl_ref at packing time.
    out = jnp.dot(s.astype(cdt), wl_ref[...], preferred_element_type=f32) + bl_ref[...]
    o_ref[...] = out.astype(o_ref.dtype)


# --------------------------------------------------------------------------- wrappers


def _round_up(n, m):
    return ((n + m - 1) // m) * m


def _pad2(a, rows, cols):
    r, c = a.shape
    return jnp.pad(a, ((0, rows - r), (0, cols - c)))


def pack_params(params, compute_dtype=jnp.bfloat16):
    """One-time packing: zero-pad output lane dims to multiples of 128 (hidden 100->128,
    output 10->128), keep the input/contraction dim of w0 UNPADDED (K=input_size) so x
    needs no wrapper-side lane pad, cast matmul weights to the compute dtype (biases
    stay f32), and fold the 1/3 mean scale into the head weight."""
    in_size, hid = params["w0"].shape
    out_size = params["wl"].shape[1]
    hid_p = _round_up(hid, 128)        # 100 -> 128
    out_p = _round_up(out_size, 128)   # 10  -> 128

    f32 = jnp.float32
    packed = {
        "w0": _pad2(params["w0"], in_size, hid_p).astype(compute_dtype),  # K unpadded
        "b0": _pad2(params["b0"], 1, hid_p).astype(f32),
        "w1": _pad2(params["w1"], hid_p, hid_p).astype(compute_dtype),
        "b1": _pad2(params["b1"], 1, hid_p).astype(f32),
        "w2": _pad2(params["w2"], hid_p, hid_p).astype(compute_dtype),
        "b2": _pad2(params["b2"], 1, hid_p).astype(f32),
        "w3": _pad2(params["w3"], hid_p, hid_p).astype(compute_dtype),
        "b3": _pad2(params["b3"], 1, hid_p).astype(f32),
        # fold the mean's 1/3 into the head weight (done once here, not per call)
        "wl": _pad2(params["wl"] * (1.0 / 3.0), hid_p, out_p).astype(compute_dtype),
        "bl": _pad2(params["bl"], 1, out_p).astype(f32),
    }
    meta = dict(in_size=in_size, hid_size=hid, out_size=out_size,
                hid_p=hid_p, out_p=out_p)
    return packed, meta


def linear_net_forward(x, packed, meta, block_batch=1024):
    """x: (B, input_size) float32; packed/meta from pack_params.
    Returns (B, output_size) logits in the compute dtype."""
    B = x.shape[0]
    in_size, out_size = meta["in_size"], meta["out_size"]
    hid_p, out_p = meta["hid_p"], meta["out_p"]
    cdt = packed["w0"].dtype
    out_itemsize = jnp.dtype(cdt).itemsize

    # Batch tiling (no padding / extra HBM passes over x):
    #   * B < 32          -> one full-batch block (block == full array dim: always legal)
    #   * 32 <= B <= bb   -> split into exactly 2 grid steps so v7x's two TensorCores
    #                        both get work (parallel grid axis); 16-row aligned for bf16
    #   * B > bb          -> bb-row tiles (>= 2 steps automatically); ragged last block
    #                        is handled by Pallas with masked output writeback
    if B < 32:
        tb = B
    elif B <= block_batch:
        tb = _round_up((B + 1) // 2, 16)
    else:
        tb = _round_up(block_batch, 16)
    grid = (pl.cdiv(B, tb),)

    operands = (
        x,
        packed["w0"], packed["b0"],
        packed["w1"], packed["b1"],
        packed["w2"], packed["b2"],
        packed["w3"], packed["b3"],
        packed["wl"], packed["bl"],
    )

    vmem = pltpu.MemorySpace.VMEM

    def replicated_spec(arr):
        # Full array, same block index for every batch tile: weights/biases are fetched
        # once and stay resident across grid steps.
        return pl.BlockSpec(arr.shape, lambda i: (0, 0), memory_space=vmem)

    in_specs = [pl.BlockSpec((tb, in_size), lambda i: (i, 0), memory_space=vmem)]
    in_specs += [replicated_spec(a) for a in operands[1:]]
    out_spec = pl.BlockSpec((tb, out_p), lambda i: (i, 0), memory_space=vmem)

    # Scoped-VMEM budget: double-buffered x/out tiles + (double-buffered) weights +
    # headroom for f32 intermediates.  Explicit so v5e's 16 MiB default never gates the
    # large tiles; capped well under v7x's 64 MiB physical VMEM.
    weight_bytes = sum(int(a.size) * a.dtype.itemsize for a in operands[1:])
    x_blk = tb * in_size * x.dtype.itemsize
    o_blk = tb * out_p * out_itemsize
    need = 2 * x_blk + 2 * o_blk + 2 * weight_bytes + 8 * tb * hid_p * 4 + (4 << 20)
    vmem_limit = int(min(56 << 20, max(32 << 20, need)))

    flops = 2 * B * (in_size * hid_p + 3 * hid_p * hid_p + hid_p * out_p)
    bytes_accessed = (int(x.size) * x.dtype.itemsize
                      + weight_bytes
                      + B * out_p * out_itemsize)
    cost = pl.CostEstimate(flops=flops, transcendentals=0,
                           bytes_accessed=bytes_accessed)

    out_padded = pl.pallas_call(
        _linear_net_kernel,
        out_shape=jax.ShapeDtypeStruct((B, out_p), cdt),   # bf16 writeback on fast path
        grid=grid,
        in_specs=in_specs,
        out_specs=out_spec,
        compiler_params=pltpu.CompilerParams(
            dimension_semantics=("parallel",),   # batch tiles shard across v7x cores
            vmem_limit_bytes=vmem_limit),
        cost_estimate=cost,
    )(*operands)

    # Useful logits live in the first `out_size` lanes of the 128-lane padded slab.
    return out_padded[:, :out_size]


# ----------------------------------------------------------------------- init / check


def init_params(key, input_size=784, hidden_size=100, output_size=10):
    """Deterministic init mimicking torch.nn.Linear default (uniform +-1/sqrt(fan_in)).
    Weights stored as (in_features, out_features)."""
    sizes = [
        ("w0", "b0", input_size, hidden_size),
        ("w1", "b1", hidden_size, hidden_size),
        ("w2", "b2", hidden_size, hidden_size),
        ("w3", "b3", hidden_size, hidden_size),
        ("wl", "bl", hidden_size, output_size),
    ]
    params = {}
    for wname, bname, fan_in, fan_out in sizes:
        key, kw, kb = jax.random.split(key, 3)
        bound = 1.0 / jnp.sqrt(jnp.float32(fan_in))
        params[wname] = jax.random.uniform(
            kw, (fan_in, fan_out), jnp.float32, minval=-bound, maxval=bound)
        params[bname] = jax.random.uniform(
            kb, (1, fan_out), jnp.float32, minval=-bound, maxval=bound)
    return params


def reference_forward(x, p):
    """Pure-JAX f32 reference matching the PyTorch forward semantics."""
    h0 = x @ p["w0"] + p["b0"]
    h1 = h0 @ p["w1"] + p["b1"]
    h2 = h1 @ p["w2"] + p["b2"]
    h3 = h2 @ p["w3"] + p["b3"]
    mean_h = jnp.mean(jnp.stack([h1, h2, h3]), axis=0)
    return mean_h @ p["wl"] + p["bl"]


# TODO(synk): CrossEntropyLoss / Adam / train() and checkpoint I/O are training-side
# utilities of the PyTorch module, not part of the forward pass; not translated.

if __name__ == "__main__":
    key = jax.random.PRNGKey(0)
    key, kx, kx2 = jax.random.split(key, 3)

    input_size, hidden_size, output_size = 784, 100, 10
    batch = 8

    params = init_params(key, input_size, hidden_size, output_size)
    x = jax.random.normal(kx, (batch, input_size), jnp.float32)
    ref = reference_forward(x, params)

    # 1) exactness check on the f32 compute path (tiny batch -> single full-array block)
    packed_f32, meta = pack_params(params, compute_dtype=jnp.float32)
    out_f32 = jax.block_until_ready(linear_net_forward(x, packed_f32, meta))
    assert out_f32.shape == (batch, output_size)
    assert jnp.allclose(out_f32, ref, atol=1e-4, rtol=1e-4), "f32 path mismatch"

    # 2) fast bf16-operand path (f32 accumulation); looser tolerance vs f32 reference
    packed_bf16, _ = pack_params(params, compute_dtype=jnp.bfloat16)
    out_bf16 = jax.block_until_ready(linear_net_forward(x, packed_bf16, meta))
    assert out_bf16.shape == (batch, output_size)
    assert jnp.allclose(out_bf16.astype(jnp.float32), ref,
                        atol=3e-2, rtol=3e-2), "bf16 path mismatch"

    # 3) larger batch exercising the 2-step parallel grid + ragged last block
    xb = jax.random.normal(kx2, (300, input_size), jnp.float32)
    refb = reference_forward(xb, params)
    outb = jax.block_until_ready(linear_net_forward(xb, packed_bf16, meta))
    assert outb.shape == (300, output_size)
    assert jnp.allclose(outb.astype(jnp.float32), refb,
                        atol=3e-2, rtol=3e-2), "batched bf16 mismatch"

    print("KERNEL_OK")
</pallas_src>

<mosaic_0001>
module attributes {stable_mosaic.version = 11 : i64} {
  func.func @_linear_net_kernel(%arg0: i32, %arg1: memref<8x784xf32, #tpu.memory_space<vmem>>, %arg2: memref<784x128xf32, #tpu.memory_space<vmem>>, %arg3: memref<1x128xf32, #tpu.memory_space<vmem>>, %arg4: memref<128x128xf32, #tpu.memory_space<vmem>>, %arg5: memref<1x128xf32, #tpu.memory_space<vmem>>, %arg6: memref<128x128xf32, #tpu.memory_space<vmem>>, %arg7: memref<1x128xf32, #tpu.memory_space<vmem>>, %arg8: memref<128x128xf32, #tpu.memory_space<vmem>>, %arg9: memref<1x128xf32, #tpu.memory_space<vmem>>, %arg10: memref<128x128xf32, #tpu.memory_space<vmem>>, %arg11: memref<1x128xf32, #tpu.memory_space<vmem>>, %arg12: memref<8x128xf32, #tpu.memory_space<vmem>>) attributes {dimension_semantics = [#tpu.dimension_semantics<parallel>], iteration_bounds = array<i64: 1>, scalar_prefetch = 0 : i64, scratch_operands = 0 : i64, tpu.core_type = #tpu.core_type<tc>, window_params = [{transform_indices = @transform_0, window_bounds = array<i64: 8, 784>}, {pipeline_mode = #tpu.pipeline_mode<synchronous>, transform_indices = @transform_1, window_bounds = array<i64: 784, 128>}, {pipeline_mode = #tpu.pipeline_mode<synchronous>, transform_indices = @transform_2, window_bounds = array<i64: 1, 128>}, {pipeline_mode = #tpu.pipeline_mode<synchronous>, transform_indices = @transform_3, window_bounds = array<i64: 128, 128>}, {pipeline_mode = #tpu.pipeline_mode<synchronous>, transform_indices = @transform_4, window_bounds = array<i64: 1, 128>}, {pipeline_mode = #tpu.pipeline_mode<synchronous>, transform_indices = @transform_5, window_bounds = array<i64: 128, 128>}, {pipeline_mode = #tpu.pipeline_mode<synchronous>, transform_indices = @transform_6, window_bounds = array<i64: 1, 128>}, {pipeline_mode = #tpu.pipeline_mode<synchronous>, transform_indices = @transform_7, window_bounds = array<i64: 128, 128>}, {pipeline_mode = #tpu.pipeline_mode<synchronous>, transform_indices = @transform_8, window_bounds = array<i64: 1, 128>}, {pipeline_mode = #tpu.pipeline_mode<synchronous>, transform_indices = @transform_9, window_bounds = array<i64: 128, 128>}, {pipeline_mode = #tpu.pipeline_mode<synchronous>, transform_indices = @transform_10, window_bounds = array<i64: 1, 128>}, {transform_indices = @transform_11, window_bounds = array<i64: 8, 128>}]} {
    %c0 = arith.constant 0 : index
    %c0_0 = arith.constant 0 : index
    %0 = vector.load %arg1[%c0, %c0_0] : memref<8x784xf32, #tpu.memory_space<vmem>>, vector<8x784xf32>
    %c0_1 = arith.constant 0 : index
    %c0_2 = arith.constant 0 : index
    %1 = vector.load %arg2[%c0_1, %c0_2] : memref<784x128xf32, #tpu.memory_space<vmem>>, vector<784x128xf32>
    %cst = arith.constant dense<0.000000e+00> : vector<8x128xf32>
    %2 = tpu.matmul %0, %1, %cst {dimension_numbers = #tpu.dot_dimension_numbers<[1], [0], [0], [1], [0, 0, 1, 1], [], []>} : vector<8x784xf32>, vector<784x128xf32>, vector<8x128xf32> -> vector<8x128xf32>
    %c0_3 = arith.constant 0 : index
    %c0_4 = arith.constant 0 : index
    %3 = vector.load %arg3[%c0_3, %c0_4] : memref<1x128xf32, #tpu.memory_space<vmem>>, vector<1x128xf32>
    %4 = vector.broadcast %3 : vector<1x128xf32> to vector<8x128xf32>
    %5 = arith.addf %2, %4 : vector<8x128xf32>
    %c0_5 = arith.constant 0 : index
    %c0_6 = arith.constant 0 : index
    %6 = vector.load %arg4[%c0_5, %c0_6] : memref<128x128xf32, #tpu.memory_space<vmem>>, vector<128x128xf32>
    %cst_7 = arith.constant dense<0.000000e+00> : vector<8x128xf32>
    %7 = tpu.matmul %5, %6, %cst_7 {dimension_numbers = #tpu.dot_dimension_numbers<[1], [0], [0], [1], [0, 0, 1, 1], [], []>} : vector<8x128xf32>, vector<128x128xf32>, vector<8x128xf32> -> vector<8x128xf32>
    %c0_8 = arith.constant 0 : index
    %c0_9 = arith.constant 0 : index
    %8 = vector.load %arg5[%c0_8, %c0_9] : memref<1x128xf32, #tpu.memory_space<vmem>>, vector<1x128xf32>
    %9 = vector.broadcast %8 : vector<1x128xf32> to vector<8x128xf32>
    %10 = arith.addf %7, %9 : vector<8x128xf32>
    %c0_10 = arith.constant 0 : index
    %c0_11 = arith.constant 0 : index
    %11 = vector.load %arg6[%c0_10, %c0_11] : memref<128x128xf32, #tpu.memory_space<vmem>>, vector<128x128xf32>
    %cst_12 = arith.constant dense<0.000000e+00> : vector<8x128xf32>
    %12 = tpu.matmul %10, %11, %cst_12 {dimension_numbers = #tpu.dot_dimension_numbers<[1], [0], [0], [1], [0, 0, 1, 1], [], []>} : vector<8x128xf32>, vector<128x128xf32>, vector<8x128xf32> -> vector<8x128xf32>
    %c0_13 = arith.constant 0 : index
    %c0_14 = arith.constant 0 : index
    %13 = vector.load %arg7[%c0_13, %c0_14] : memref<1x128xf32, #tpu.memory_space<vmem>>, vector<1x128xf32>
    %14 = vector.broadcast %13 : vector<1x128xf32> to vector<8x128xf32>
    %15 = arith.addf %12, %14 : vector<8x128xf32>
    %16 = arith.addf %10, %15 : vector<8x128xf32>
    %c0_15 = arith.constant 0 : index
    %c0_16 = arith.constant 0 : index
    %17 = vector.load %arg8[%c0_15, %c0_16] : memref<128x128xf32, #tpu.memory_space<vmem>>, vector<128x128xf32>
    %cst_17 = arith.constant dense<0.000000e+00> : vector<8x128xf32>
    %18 = tpu.matmul %15, %17, %cst_17 {dimension_numbers = #tpu.dot_dimension_numbers<[1], [0], [0], [1], [0, 0, 1, 1], [], []>} : vector<8x128xf32>, vector<128x128xf32>, vector<8x128xf32> -> vector<8x128xf32>
    %c0_18 = arith.constant 0 : index
    %c0_19 = arith.constant 0 : index
    %19 = vector.load %arg9[%c0_18, %c0_19] : memref<1x128xf32, #tpu.memory_space<vmem>>, vector<1x128xf32>
    %20 = vector.broadcast %19 : vector<1x128xf32> to vector<8x128xf32>
    %21 = arith.addf %18, %20 : vector<8x128xf32>
    %22 = arith.addf %16, %21 : vector<8x128xf32>
    %c0_20 = arith.constant 0 : index
    %c0_21 = arith.constant 0 : index
    %23 = vector.load %arg10[%c0_20, %c0_21] : memref<128x128xf32, #tpu.memory_space<vmem>>, vector<128x128xf32>
    %cst_22 = arith.constant dense<0.000000e+00> : vector<8x128xf32>
    %24 = tpu.matmul %22, %23, %cst_22 {dimension_numbers = #tpu.dot_dimension_numbers<[1], [0], [0], [1], [0, 0, 1, 1], [], []>} : vector<8x128xf32>, vector<128x128xf32>, vector<8x128xf32> -> vector<8x128xf32>
    %c0_23 = arith.constant 0 : index
    %c0_24 = arith.constant 0 : index
    %25 = vector.load %arg11[%c0_23, %c0_24] : memref<1x128xf32, #tpu.memory_space<vmem>>, vector<1x128xf32>
    %26 = vector.broadcast %25 : vector<1x128xf32> to vector<8x128xf32>
    %27 = arith.addf %24, %26 : vector<8x128xf32>
    %c0_25 = arith.constant 0 : index
    %c0_26 = arith.constant 0 : index
    %28 = vector.load %arg12[%c0_25, %c0_26] : memref<8x128xf32, #tpu.memory_space<vmem>>, vector<8x128xf32>
    tpu.vector_store %arg12[%c0_25, %c0_26], %27 {strides = array<i32>} : memref<8x128xf32, #tpu.memory_space<vmem>>, vector<8x128xf32>,
    return
  }
  func.func @transform_0(%arg0: i32) -> (i32, i32) {
    %c0_i32 = arith.constant 0 : i32
    %c0_i32_0 = arith.constant 0 : i32
    return %arg0, %c0_i32 : i32, i32
  }
  func.func @transform_1(%arg0: i32) -> (i32, i32) {
    %c0_i32 = arith.constant 0 : i32
    %c0_i32_0 = arith.constant 0 : i32
    %c0_i32_1 = arith.constant 0 : i32
    return %c0_i32, %c0_i32_0 : i32, i32
  }
  func.func @transform_2(%arg0: i32) -> (i32, i32) {
    %c0_i32 = arith.constant 0 : i32
    %c0_i32_0 = arith.constant 0 : i32
    %c0_i32_1 = arith.constant 0 : i32
    return %c0_i32, %c0_i32_0 : i32, i32
  }
  func.func @transform_3(%arg0: i32) -> (i32, i32) {
    %c0_i32 = arith.constant 0 : i32
    %c0_i32_0 = arith.constant 0 : i32
    %c0_i32_1 = arith.constant 0 : i32
    return %c0_i32, %c0_i32_0 : i32, i32
  }
  func.func @transform_4(%arg0: i32) -> (i32, i32) {
    %c0_i32 = arith.constant 0 : i32
    %c0_i32_0 = arith.constant 0 : i32
    %c0_i32_1 = arith.constant 0 : i32
    return %c0_i32, %c0_i32_0 : i32, i32
  }
  func.func @transform_5(%arg0: i32) -> (i32, i32) {
    %c0_i32 = arith.constant 0 : i32
    %c0_i32_0 = arith.constant 0 : i32
    %c0_i32_1 = arith.constant 0 : i32
    return %c0_i32, %c0_i32_0 : i32, i32
  }
  func.func @transform_6(%arg0: i32) -> (i32, i32) {
    %c0_i32 = arith.constant 0 : i32
    %c0_i32_0 = arith.constant 0 : i32
    %c0_i32_1 = arith.constant 0 : i32
    return %c0_i32, %c0_i32_0 : i32, i32
  }
  func.func @transform_7(%arg0: i32) -> (i32, i32) {
    %c0_i32 = arith.constant 0 : i32
    %c0_i32_0 = arith.constant 0 : i32
    %c0_i32_1 = arith.constant 0 : i32
    return %c0_i32, %c0_i32_0 : i32, i32
  }
  func.func @transform_8(%arg0: i32) -> (i32, i32) {
    %c0_i32 = arith.constant 0 : i32
    %c0_i32_0 = arith.constant 0 : i32
    %c0_i32_1 = arith.constant 0 : i32
    return %c0_i32, %c0_i32_0 : i32, i32
  }
  func.func @transform_9(%arg0: i32) -> (i32, i32) {
    %c0_i32 = arith.constant 0 : i32
    %c0_i32_0 = arith.constant 0 : i32
    %c0_i32_1 = arith.constant 0 : i32
    return %c0_i32, %c0_i32_0 : i32, i32
  }
  func.func @transform_10(%arg0: i32) -> (i32, i32) {
    %c0_i32 = arith.constant 0 : i32
    %c0_i32_0 = arith.constant 0 : i32
    %c0_i32_1 = arith.constant 0 : i32
    return %c0_i32, %c0_i32_0 : i32, i32
  }
  func.func @transform_11(%arg0: i32) -> (i32, i32) {
    %c0_i32 = arith.constant 0 : i32
    %c0_i32_0 = arith.constant 0 : i32
    return %arg0, %c0_i32 : i32, i32
  }
}

</mosaic_0001>

<bundles_post_ra>
// kernel: tpu_custom_call.1
= control target key start
LH: loop header
LB: loop body
LE: loop exit
PB: predicated region body
PF: predicated region fallthrough
CT: control target
= control target key end

     0   :  { %16 = vsyncpa [#allocation3], 0  ;;  %s1837_s0 = inlined_call_operand.hbm [shape: f32[8,784], index: 0, kind: input, shape index: {}]   ;;  %s1838_s1 = inlined_call_operand.hbm [shape: f32[784,128], index: 1, kind: input, shape index: {}]   ;;  %s1839_s2 = inlined_call_operand.vmem [shape: f32[1,128], index: 2, kind: input, shape index: {}]   ;;  %s1840_s3 = inlined_call_operand.hbm [shape: f32[128,128], index: 3, kind: input, shape index: {}]   ;;  %s1841_s4 = inlined_call_operand.vmem [shape: f32[1,128], index: 4, kind: input, shape index: {}]   ;;  %s1842_s5 = inlined_call_operand.hbm [shape: f32[128,128], index: 5, kind: input, shape index: {}]   ;;  %s1843_s6 = inlined_call_operand.vmem [shape: f32[1,128], index: 6, kind: input, shape index: {}]   ;;  %s1844_s7 = inlined_call_operand.hbm [shape: f32[128,128], index: 7, kind: input, shape index: {}]   ;;  %s1845_s8 = inlined_call_operand.vmem [shape: f32[1,128], index: 8, kind: input, shape index: {}]   ;;  %s1846_s9 = inlined_call_operand.hbm [shape: f32[128,128], index: 9, kind: input, shape index: {}]   ;;  %s1847_s10 = inlined_call_operand.vmem [shape: f32[1,128], index: 10, kind: input, shape index: {}]   ;;  %s1848_s11 = inlined_call_operand.hbm [shape: f32[8,128], index: 11, kind: output, shape index: {}]  }
   0x1   :  { %17 = vsyncpa [#allocation6], 0 }
   0x2   :  { %18 = vsyncpa [#allocation9], 0 }
   0x3   :  { %19 = vsyncpa [#allocation12], 0 }
   0x4   :  { %20 = vsyncpa [#allocation4], 0  ;;  %s1608_s17 = smov [#allocation5]   ;;  %s1444_s21 = scalar_lea.hbm %s1838_s1, 12544 }
   0x5   :  { %s36_s18 = sshll.u32 %s1608_s17, 4  ;;  %p1445_p0 = scmp.ne.s32.totalorder %s1838_s1, %s1444_s21  ;;  %s37_s18 = int_to_ptr.vmem [resolvable:$true] %s36_s18 }
   0x6   :  { %p1448_p1 = scmp.lt.u32.totalorder %s1444_s21, %s1838_s1 }
   0x8   :  { %p1450_p2 = pnand %p1448_p1, %p1445_p0 }
   0xa   :  { %1453 = shalt.err (!%p1450_p2)
}
   0xb   :  { %s1454_s26 = scalar_lea.vmem %s37_s18, 12544  ;;  %p1459_p4 = scmp.lt.s32.totalorder %s37_s18, %s37_s18 }
   0xc   :  { %p1455_p3 = scmp.ne.s32.totalorder %s37_s18, %s1454_s26  ;;  %p1460_p5 = scmp.lt.s32.totalorder %s1454_s26, %s1454_s26 }
   0xe   :  { %p1461_p6 = por %p1460_p5, %p1459_p4 }
  0x10   :  { %p1462_p7 = pnand %p1461_p6, %p1455_p3 }
  0x12   :  { %1465 = shalt.err (!%p1462_p7)
}
  0x13   :  { %s1609_s27 = smov 128   ;;  %s1610_s28 = smov 8  }
  0x14   :  { %42 = dma.hbm_to_vmem [thread:$0]  %s1838_s1, 12544, %s37_s18, [#allocation6], %s1609_s27, %s1609_s27, %s1610_s28  }
  0x15   :  { %s1611_s12 = smov [#allocation8]   ;;  %s1612_s14 = smov [#allocation2]  }
  0x16   :  { %s64_s13 = sshll.u32 %s1611_s12, 4  ;;  %s27_s15 = sshll.u32 %s1612_s14, 4  ;;  %s65_s13 = int_to_ptr.vmem [resolvable:$true] %s64_s13  ;;  %s28_s15 = int_to_ptr.vmem [resolvable:$true] %s27_s15 }
  0x17   :  { %s1466_s19 = scalar_lea.hbm %s1842_s5, 2048 }
  0x18   :  { %p1467_p8 = scmp.ne.s32.totalorder %s1842_s5, %s1466_s19  ;;  %p1470_p9 = scmp.lt.u32.totalorder %s1466_s19, %s1842_s5 }
  0x1a   :  { %p1472_p10 = pnand %p1470_p9, %p1467_p8 }
  0x1c   :  { %1475 = shalt.err (!%p1472_p10)
}
  0x1d   :  { %s1476_s1 = scalar_lea.vmem %s65_s13, 2048  ;;  %p1481_p12 = scmp.lt.s32.totalorder %s65_s13, %s65_s13 }
  0x1e   :  { %p1477_p11 = scmp.ne.s32.totalorder %s65_s13, %s1476_s1  ;;  %p1482_p13 = scmp.lt.s32.totalorder %s1476_s1, %s1476_s1 }
  0x20   :  { %p1483_p0 = por %p1482_p13, %p1481_p12 }
  0x22   :  { %p1484_p1 = pnand %p1483_p0, %p1477_p11 }
  0x24   :  { %1487 = shalt.err (!%p1484_p1)
}
  0x25   :  { %70 = dma.hbm_to_vmem [thread:$0]  %s1842_s5, 2048, %s65_s13, [#allocation9], %s1609_s27, %s1609_s27, %s1610_s28  }
  0x26   :  { %s1488_s29 = scalar_lea.hbm %s1837_s0, 896 }
  0x27   :  { %p1489_p2 = scmp.ne.s32.totalorder %s1837_s0, %s1488_s29  ;;  %p1492_p3 = scmp.lt.u32.totalorder %s1488_s29, %s1837_s0 }
  0x29   :  { %p1494_p4 = pnand %p1492_p3, %p1489_p2 }
  0x2b   :  { %1497 = shalt.err (!%p1494_p4)
}
  0x2c   :  { %s1498_s17 = scalar_lea.vmem %s28_s15, 896  ;;  %p1503_p6 = scmp.lt.s32.totalorder %s28_s15, %s28_s15 }
  0x2d   :  { %p1499_p5 = scmp.ne.s32.totalorder %s28_s15, %s1498_s17  ;;  %p1504_p7 = scmp.lt.s32.totalorder %s1498_s17, %s1498_s17 }
  0x2f   :  { %p1505_p8 = por %p1504_p7, %p1503_p6 }
  0x31   :  { %p1506_p9 = pnand %p1505_p8, %p1499_p5 }
  0x33   :  { %1509 = shalt.err (!%p1506_p9)
}
  0x34   :  { %30 = dma.hbm_to_vmem [thread:$0]  %s1837_s0, 896, %s28_s15, [#allocation3]  }
  0x35   :  { %s1613_s19 = smov [#allocation7]   ;;  %s1614_s21 = smov [#allocation10]  }
  0x36   :  { %s50_s20 = sshll.u32 %s1613_s19, 4  ;;  %s78_s22 = sshll.u32 %s1614_s21, 4  ;;  %s51_s20 = int_to_ptr.vmem [resolvable:$true] %s50_s20  ;;  %s79_s22 = int_to_ptr.vmem [resolvable:$true] %s78_s22 }
  0x37   :  { %s1510_s18 = scalar_lea.hbm %s1840_s3, 2048 }
  0x38   :  { %p1511_p10 = scmp.ne.s32.totalorder %s1840_s3, %s1510_s18  ;;  %p1514_p11 = scmp.lt.u32.totalorder %s1510_s18, %s1840_s3 }
  0x3a   :  { %p1516_p12 = pnand %p1514_p11, %p1511_p10 }
  0x3c   :  { %1519 = shalt.err (!%p1516_p12)
}
  0x3d   :  { %s1520_s0 = scalar_lea.vmem %s51_s20, 2048  ;;  %p1525_p0 = scmp.lt.s32.totalorder %s51_s20, %s51_s20 }
  0x3e   :  { %p1521_p13 = scmp.ne.s32.totalorder %s51_s20, %s1520_s0  ;;  %p1526_p1 = scmp.lt.s32.totalorder %s1520_s0, %s1520_s0 }
  0x40   :  { %p1527_p2 = por %p1526_p1, %p1525_p0 }
  0x42   :  { %p1528_p3 = pnand %p1527_p2, %p1521_p13 }
  0x44   :  { %1531 = shalt.err (!%p1528_p3)
}
  0x45   :  { %56 = dma.hbm_to_vmem [thread:$0]  %s1840_s3, 2048, %s51_s20, [#allocation6], %s1609_s27, %s1609_s27, %s1610_s28  }
  0x46   :  { %s1532_s16 = scalar_lea.hbm %s1844_s7, 2048 }
  0x47   :  { %p1533_p4 = scmp.ne.s32.totalorder %s1844_s7, %s1532_s16  ;;  %p1536_p5 = scmp.lt.u32.totalorder %s1532_s16, %s1844_s7 }
  0x49   :  { %p1538_p6 = pnand %p1536_p5, %p1533_p4 }
  0x4b   :  { %1541 = shalt.err (!%p1538_p6)
}
  0x4c   :  { %s1542_s21 = scalar_lea.vmem %s79_s22, 2048  ;;  %p1547_p8 = scmp.lt.s32.totalorder %s79_s22, %s79_s22 }
  0x4d   :  { %p1543_p7 = scmp.ne.s32.totalorder %s79_s22, %s1542_s21  ;;  %p1548_p9 = scmp.lt.s32.totalorder %s1542_s21, %s1542_s21 }
  0x4f   :  { %p1549_p10 = por %p1548_p9, %p1547_p8 }
  0x51   :  { %p1550_p11 = pnand %p1549_p10, %p1543_p7 }
  0x53   :  { %1553 = shalt.err (!%p1550_p11)
}
  0x54   :  { %84 = dma.hbm_to_vmem [thread:$0]  %s1844_s7, 2048, %s79_s22, [#allocation9], %s1609_s27, %s1609_s27, %s1610_s28  }
  0x55   :  { %s1615_s23 = smov [#allocation11]   ;;  %s1554_s25 = scalar_lea.hbm %s1846_s9, 2048 }
  0x56   :  { %s92_s1 = sshll.u32 %s1615_s23, 4  ;;  %p1555_p12 = scmp.ne.s32.totalorder %s1846_s9, %s1554_s25  ;;  %s93_s1 = int_to_ptr.vmem [resolvable:$true] %s92_s1 }
  0x57   :  { %p1558_p13 = scmp.lt.u32.totalorder %s1554_s25, %s1846_s9 }
  0x59   :  { %p1560_p0 = pnand %p1558_p13, %p1555_p12 }
  0x5b   :  { %1563 = shalt.err (!%p1560_p0)
}
  0x5c   :  { %s1564_s30 = scalar_lea.vmem %s93_s1, 2048  ;;  %p1569_p2 = scmp.lt.s32.totalorder %s93_s1, %s93_s1 }
  0x5d   :  { %p1565_p1 = scmp.ne.s32.totalorder %s93_s1, %s1564_s30  ;;  %p1570_p3 = scmp.lt.s32.totalorder %s1564_s30, %s1564_s30 }
  0x5f   :  { %p1571_p4 = por %p1570_p3, %p1569_p2 }
  0x61   :  { %p1572_p5 = pnand %p1571_p4, %p1565_p1 }
  0x63   :  { %1575 = shalt.err (!%p1572_p5)
}
  0x64   :  { %98 = dma.hbm_to_vmem [thread:$0]  %s1846_s9, 2048, %s93_s1, [#allocation12], %s1609_s27, %s1609_s27, %s1610_s28  }
  0x65   :  { %1598 = dma.done.wait [#allocation3], 896  }
  0x66   :  { %1599 = vsyncadd [#allocation3], 4294966400 }
  0x67   :  { %1600 = dma.done.wait [#allocation6], 14592  }
  0x68   :  { %1601 = vsyncadd [#allocation6], 4294952704 }
  0x69   :  { %1602 = dma.done.wait [#allocation9], 4096  }
  0x6a   :  { %1603 = vsyncadd [#allocation9], 4294963200 }
  0x6b   :  { %1604 = dma.done.wait [#allocation12], 2048  }
  0x6c   :  { %1605 = vsyncadd [#allocation12], 4294965248  ;;  %v142_v0 = vld [vmem:[#allocation5 + $0x80] sm:$0xff]  ;;  %v143_v1 = vld [vmem:[#allocation5 + $0x88] sm:$0xff]  ;;  %vm1617_vm0 = vmmov 0   ;;  %vm231_vm1 = vcmask 130048  }
  0x6d   :  { %v126_v2 = vld [vmem:[#allocation5] sm:$0xff]  ;;  %v1237_v3 = vpack.c.bf16 %v143_v1, %v142_v0  ;;  %v127_v4 = vld [vmem:[#allocation5 + $0x8] sm:$0xff]  ;;  %v144_v11 = vld [vmem:[#allocation5 + $0x90] sm:$0xff]  ;;  %s1619_s5 = smov [#allocation13]  }
  0x6e   :  { %v174_v5 = vld [vmem:[#allocation5 + $0x180] sm:$0xff]  ;;  %v175_v6 = vld [vmem:[#allocation5 + $0x188] sm:$0xff]  ;;  %v1239_v7 = vpack.c.bf16 %v127_v4, %v126_v2  ;;  %v145_v13 = vld [vmem:[#allocation5 + $0x98] sm:$0xff]  ;;  %s896_s13 = sshll.u32 %s1619_s5, 4  ;;  %s897_s13 = int_to_ptr.vmem [resolvable:$true] %s896_s13 }
  0x6f   :  { %v1269_v8 = vpack.c.bf16 %v175_v6, %v174_v5  ;;  %v158_v9 = vld [vmem:[#allocation5 + $0x100] sm:$0xff]  ;;  %v159_v10 = vld [vmem:[#allocation5 + $0x108] sm:$0xff]  ;;  %1238 = vmatprep.subr.bf16.mxu0 %v1237_v3  ;;  %v128_v14 = vld [vmem:[#allocation5 + $0x10] sm:$0xff]  ;;  %v1241_v16 = vpack.c.bf16 %v145_v13, %v144_v11  ;;  %s1576_s19 = scalar_lea.vmem %s897_s13, 128  ;;  %p1581_p7 = scmp.lt.s32.totalorder %s897_s13, %s897_s13 }
  0x70   :  { %v1271_v12 = vpack.c.bf16 %v159_v10, %v158_v9  ;;  %v129_v15 = vld [vmem:[#allocation5 + $0x18] sm:$0xff]  ;;  %1240 = vmatpush3.bf16.msra.mxu0 %v1239_v7  ;;  %v176_v18 = vld [vmem:[#allocation5 + $0x190] sm:$0xff]  ;;  %v146_v23 = vld [vmem:[#allocation5 + $0xa0] sm:$0xff]  ;;  %p1577_p6 = scmp.ne.s32.totalorder %s897_s13, %s1576_s19  ;;  %p1582_p8 = scmp.lt.s32.totalorder %s1576_s19, %s1576_s19 }
  0x71   :  { %1270 = vmatprep.subr.bf16.mxu1 %v1269_v8  ;;  %v1243_v17 = vpack.c.bf16 %v129_v15, %v128_v14  ;;  %v177_v19 = vld [vmem:[#allocation5 + $0x198] sm:$0xff]  ;;  %v160_v20 = vld [vmem:[#allocation5 + $0x110] sm:$0xff]  ;;  %v147_v24 = vld [vmem:[#allocation5 + $0xa8] sm:$0xff]  ;;  %1242 = vmatprep.subr.bf16.mxu0 %v1241_v16 }
  0x72   :  { %1272 = vmatpush3.bf16.msra.mxu1 %v1271_v12  ;;  %v1273_v21 = vpack.c.bf16 %v177_v19, %v176_v18  ;;  %v161_v22 = vld [vmem:[#allocation5 + $0x118] sm:$0xff]  ;;  %v1245_v26 = vpack.c.bf16 %v147_v24, %v146_v23  ;;  %v130_v27 = vld [vmem:[#allocation5 + $0x20] sm:$0xff]  ;;  %v131_v28 = vld [vmem:[#allocation5 + $0x28] sm:$0xff]  ;;  %p1583_p9 = por %p1582_p8, %p1581_p7 }
  0x73   :  { %v1275_v25 = vpack.c.bf16 %v161_v22, %v160_v20  ;;  %v178_v29 = vld [vmem:[#allocation5 + $0x1a0] sm:$0xff]  ;;  %v179_v30 = vld [vmem:[#allocation5 + $0x1a8] sm:$0xff]  ;;  %v1247_v33 = vpack.c.bf16 %v131_v28, %v130_v27  ;;  %v148_v35 = vld [vmem:[#allocation5 + $0xb0] sm:$0xff] }
  0x74   :  { %1274 = vmatprep.subr.bf16.mxu1 %v1273_v21  ;;  %v162_v31 = vld [vmem:[#allocation5 + $0x120] sm:$0xff]  ;;  %v163_v32 = vld [vmem:[#allocation5 + $0x128] sm:$0xff]  ;;  %1244 = vmatpush3.bf16.msra.mxu0 %v1243_v17  ;;  %v1277_v34 = vpack.c.bf16 %v179_v30, %v178_v29  ;;  %v149_v36 = vld [vmem:[#allocation5 + $0xb8] sm:$0xff]  ;;  %p1584_p10 = pnand %p1583_p9, %p1577_p6 }
  0x75   :  { %v132_v37 = vld [vmem:[#allocation5 + $0x30] sm:$0xff]  ;;  %1246 = vmatprep.subr.bf16.mxu0 %v1245_v26  ;;  %v1279_v38 = vpack.c.bf16 %v163_v32, %v162_v31  ;;  %v1249_v39 = vpack.c.bf16 %v149_v36, %v148_v35  ;;  %v133_v40 = vld [vmem:[#allocation5 + $0x38] sm:$0xff]  ;;  %v150_v46 = vld [vmem:[#allocation5 + $0xc0] sm:$0xff] }
  0x76   :  { %1276 = vmatpush3.bf16.msra.mxu1 %v1275_v25  ;;  %v180_v41 = vld [vmem:[#allocation5 + $0x1b0] sm:$0xff]  ;;  %v181_v42 = vld [vmem:[#allocation5 + $0x1b8] sm:$0xff]  ;;  %v151_v47 = vld [vmem:[#allocation5 + $0xc8] sm:$0xff]  ;;  %v1251_v48 = vpack.c.bf16 %v133_v40, %v132_v37 }
  0x77   :  { %1278 = vmatprep.subr.bf16.mxu1 %v1277_v34  ;;  %v1281_v43 = vpack.c.bf16 %v181_v42, %v180_v41  ;;  %v164_v44 = vld [vmem:[#allocation5 + $0x130] sm:$0xff]  ;;  %v165_v45 = vld [vmem:[#allocation5 + $0x138] sm:$0xff]  ;;  %v182_v49 = vld [vmem:[#allocation5 + $0x1c0] sm:$0xff]  ;;  %v1253_v52 = vpack.c.bf16 %v151_v47, %v150_v46 }
  0x78   :  { %1248 = vmatpush3.bf16.msra.mxu0 %v1247_v33  ;;  %v183_v50 = vld [vmem:[#allocation5 + $0x1c8] sm:$0xff]  ;;  %v1283_v51 = vpack.c.bf16 %v165_v45, %v164_v44  ;;  %v134_v53 = vld [vmem:[#allocation5 + $0x40] sm:$0xff]  ;;  %v152_v58 = vld [vmem:[#allocation5 + $0xd0] sm:$0xff] }
  0x79   :  { %1250 = vmatprep.subr.bf16.mxu0 %v1249_v39  ;;  %v135_v54 = vld [vmem:[#allocation5 + $0x48] sm:$0xff]  ;;  %v166_v55 = vld [vmem:[#allocation5 + $0x140] sm:$0xff]  ;;  %v1285_v56 = vpack.c.bf16 %v183_v50, %v182_v49  ;;  %v153_v59 = vld [vmem:[#allocation5 + $0xd8] sm:$0xff]  ;;  %v1616_v50 = vmov 0.0|0.0  }
  0x7a   :  { %1280 = vmatpush3.bf16.msra.mxu1 %v1279_v38  ;;  %v167_v57 = vld [vmem:[#allocation5 + $0x148] sm:$0xff]  ;;  %v184_v60 = vld [vmem:[#allocation5 + $0x1d0] sm:$0xff]  ;;  %v185_v61 = vld [vmem:[#allocation5 + $0x1d8] sm:$0xff]  ;;  %v1255_v62 = vpack.c.bf16 %v135_v54, %v134_v53  ;;  %v1257_v0 = vpack.c.bf16 %v153_v59, %v152_v58 }
  0x7b   :  { %1282 = vmatprep.subr.bf16.mxu1 %v1281_v43  ;;  %v1287_v63 = vpack.c.bf16 %v167_v57, %v166_v55  ;;  %v136_v1 = vld [vmem:[#allocation5 + $0x50] sm:$0xff]  ;;  %v137_v2 = vld [vmem:[#allocation5 + $0x58] sm:$0xff]  ;;  %v1289_v4 = vpack.c.bf16 %v185_v61, %v184_v60  ;;  %v154_v6 = vld [vmem:[#allocation5 + $0xe0] sm:$0xff]  ;;  %v1618_v60 = vmov 0.0  }
  0x7c   :  { %1252 = vmatpush3.bf16.msra.mxu0 %v1251_v48  ;;  %v168_v3 = vld [vmem:[#allocation5 + $0x150] sm:$0xff]  ;;  %v169_v5 = vld [vmem:[#allocation5 + $0x158] sm:$0xff]  ;;  %v155_v7 = vld [vmem:[#allocation5 + $0xe8] sm:$0xff]  ;;  %v1259_v10 = vpack.c.bf16 %v137_v2, %v136_v1 }
  0x7d   :  { %1254 = vmatprep.subr.bf16.mxu0 %v1253_v52  ;;  %v186_v8 = vld [vmem:[#allocation5 + $0x1e0] sm:$0xff]  ;;  %v187_v9 = vld [vmem:[#allocation5 + $0x1e8] sm:$0xff]  ;;  %v120_v12 = vld [vmem:[#allocation2 + $0x8] sm:$0xff]  ;;  %v1291_v13 = vpack.c.bf16 %v169_v5, %v168_v3  ;;  %v1261_v14 = vpack.c.bf16 %v155_v7, %v154_v6 }
  0x7e   :  { %1284 = vmatpush3.bf16.msra.mxu1 %v1283_v51  ;;  %v138_v11 = vld [vmem:[#allocation5 + $0x60] sm:$0xff]  ;;  %v139_v15 = vld [vmem:[#allocation5 + $0x68] sm:$0xff]  ;;  %v1293_v18 = vpack.c.bf16 %v187_v9, %v186_v8  ;;  %v156_v19 = vld [vmem:[#allocation5 + $0xf0] sm:$0xff]  ;;  %299 = vmatprep.mubr.f32.mxu0 %v120_v12 }
  0x7f   :  { %1286 = vmatprep.subr.bf16.mxu1 %v1285_v56  ;;  %v170_v16 = vld [vmem:[#allocation5 + $0x160] sm:$0xff]  ;;  %v171_v17 = vld [vmem:[#allocation5 + $0x168] sm:$0xff]  ;;  %v157_v20 = vld [vmem:[#allocation5 + $0xf8] sm:$0xff]  ;;  %v1263_v24 = vpack.c.bf16 %v139_v15, %v138_v11 }
  0x80   :  { %1256 = vmatpush3.bf16.msra.mxu0 %v1255_v62  ;;  %v122_v21 = vld [vmem:[#allocation2 + $0x18] sm:$0xff]  ;;  %v188_v22 = vld [vmem:[#allocation5 + $0x1f0] sm:$0xff]  ;;  %v189_v23 = vld [vmem:[#allocation5 + $0x1f8] sm:$0xff]  ;;  %v1295_v25 = vpack.c.bf16 %v171_v17, %v170_v16  ;;  %v1265_v26 = vpack.c.bf16 %v157_v20, %v156_v19 }
  0x81   :  { %1258 = vmatprep.subr.bf16.mxu0 %v1257_v0  ;;  %369 = vmatprep.mubr.f32.mxu1 %v122_v21  ;;  %v140_v27 = vld [vmem:[#allocation5 + $0x70] sm:$0xff]  ;;  %v141_v28 = vld [vmem:[#allocation5 + $0x78] sm:$0xff]  ;;  %v1297_v30 = vpack.c.bf16 %v189_v23, %v188_v22  ;;  %v206_v32 = vld [vmem:[#allocation5 + $0x280] sm:$0xff] }
  0x82   :  { %1288 = vmatpush3.bf16.msra.mxu1 %v1287_v63  ;;  %v172_v29 = vld [vmem:[#allocation5 + $0x170] sm:$0xff]  ;;  %v173_v31 = vld [vmem:[#allocation5 + $0x178] sm:$0xff]  ;;  %v207_v33 = vld [vmem:[#allocation5 + $0x288] sm:$0xff]  ;;  %v1267_v34 = vpack.c.bf16 %v141_v28, %v140_v27 }
  0x83   :  { %1290 = vmatprep.subr.bf16.mxu1 %v1289_v4  ;;  %v1299_v35 = vpack.c.bf16 %v173_v31, %v172_v29  ;;  %v1301_v36 = vpack.c.bf16 %v207_v33, %v206_v32  ;;  %v190_v37 = vld [vmem:[#allocation5 + $0x200] sm:$0xff]  ;;  %v191_v38 = vld [vmem:[#allocation5 + $0x208] sm:$0xff]  ;;  %v208_v39 = vld [vmem:[#allocation5 + $0x290] sm:$0xff] }
  0x84   :  { %1260 = vmatpush3.bf16.msra.mxu0 %v1259_v10  ;;  %v209_v40 = vld [vmem:[#allocation5 + $0x298] sm:$0xff]  ;;  %v119_v41 = vld [vmem:[#allocation2] sm:$0xff]  ;;  %v1303_v42 = vpack.c.bf16 %v191_v38, %v190_v37  ;;  %v192_v44 = vld [vmem:[#allocation5 + $0x210] sm:$0xff] }
  0x85   :  { %1262 = vmatprep.subr.bf16.mxu0 %v1261_v14  ;;  %v121_v43 = vld [vmem:[#allocation2 + $0x10] sm:$0xff]  ;;  %v1305_v45 = vpack.c.bf16 %v209_v40, %v208_v39  ;;  %v210_v47 = vld [vmem:[#allocation5 + $0x2a0] sm:$0xff]  ;;  %v211_v48 = vld [vmem:[#allocation5 + $0x2a8] sm:$0xff] }
  0x86   :  { %1292 = vmatpush3.bf16.msra.mxu1 %v1291_v13  ;;  %v193_v46 = vld [vmem:[#allocation5 + $0x218] sm:$0xff]  ;;  %v124_v49 = vld [vmem:[#allocation2 + $0x28] sm:$0xff]  ;;  %v222_v51 = vld [vmem:[#allocation5 + $0x300] sm:$0xff]  ;;  %v1309_v55 = vpack.c.bf16 %v211_v48, %v210_v47 }
  0x87   :  { %1294 = vmatprep.subr.bf16.mxu1 %v1293_v18  ;;  %v223_v52 = vld [vmem:[#allocation5 + $0x308] sm:$0xff]  ;;  %v1307_v54 = vpack.c.bf16 %v193_v46, %v192_v44  ;;  %v194_v56 = vld [vmem:[#allocation5 + $0x220] sm:$0xff]  ;;  %v212_v58 = vld [vmem:[#allocation5 + $0x2b0] sm:$0xff] }
  0x88   :  { %1264 = vmatpush3.bf16.msra.mxu0 %v1263_v24  ;;  %v1334_v53 = vpack.c.bf16 %v223_v52, %v222_v51  ;;  %v195_v57 = vld [vmem:[#allocation5 + $0x228] sm:$0xff]  ;;  %v213_v59 = vld [vmem:[#allocation5 + $0x2b8] sm:$0xff]  ;;  %v196_v0 = vld [vmem:[#allocation5 + $0x230] sm:$0xff] }
  0x89   :  { %1266 = vmatprep.subr.bf16.mxu0 %v1265_v26  ;;  %v125_v61 = vld [vmem:[#allocation2 + $0x30] sm:$0xff]  ;;  %v1311_v62 = vpack.c.bf16 %v195_v57, %v194_v56  ;;  %v1313_v63 = vpack.c.bf16 %v213_v59, %v212_v58  ;;  %v214_v2 = vld [vmem:[#allocation5 + $0x2c0] sm:$0xff]  ;;  %v215_v3 = vld [vmem:[#allocation5 + $0x2c8] sm:$0xff] }
  0x8a   :  { %1296 = vmatpush3.bf16.msra.mxu1 %v1295_v25  ;;  %v197_v1 = vld [vmem:[#allocation5 + $0x238] sm:$0xff]  ;;  %v1317_v5 = vpack.c.bf16 %v215_v3, %v214_v2  ;;  %v198_v6 = vld [vmem:[#allocation5 + $0x240] sm:$0xff]  ;;  %v199_v7 = vld [vmem:[#allocation5 + $0x248] sm:$0xff] }
  0x8b   :  { %1298 = vmatprep.subr.bf16.mxu1 %v1297_v30  ;;  %v1315_v4 = vpack.c.bf16 %v197_v1, %v196_v0  ;;  %v216_v8 = vld [vmem:[#allocation5 + $0x2d0] sm:$0xff]  ;;  %v217_v9 = vld [vmem:[#allocation5 + $0x2d8] sm:$0xff]  ;;  %v1319_v10 = vpack.c.bf16 %v199_v7, %v198_v6  ;;  %v218_v14 = vld [vmem:[#allocation5 + $0x2e0] sm:$0xff] }
  0x8c   :  { %1268 = vmatpush3.bf16.msra.mxu0 %v1267_v34  ;;  %v1321_v11 = vpack.c.bf16 %v217_v9, %v216_v8  ;;  %v200_v12 = vld [vmem:[#allocation5 + $0x250] sm:$0xff]  ;;  %v201_v13 = vld [vmem:[#allocation5 + $0x258] sm:$0xff]  ;;  %v219_v15 = vld [vmem:[#allocation5 + $0x2e8] sm:$0xff] }
  0x8d   :  { %1302 = vmatprep.subr.bf16.mxu0 %v1301_v36  ;;  %v1323_v16 = vpack.c.bf16 %v201_v13, %v200_v12  ;;  %v1325_v17 = vpack.c.bf16 %v219_v15, %v218_v14  ;;  %v202_v18 = vld [vmem:[#allocation5 + $0x260] sm:$0xff]  ;;  %v203_v19 = vld [vmem:[#allocation5 + $0x268] sm:$0xff]  ;;  %v220_v20 = vld [vmem:[#allocation5 + $0x2f0] sm:$0xff] }
  0x8e   :  { %1300 = vmatpush3.bf16.msra.mxu1 %v1299_v35  ;;  %v221_v21 = vld [vmem:[#allocation5 + $0x2f8] sm:$0xff]  ;;  %v1327_v22 = vpack.c.bf16 %v203_v19, %v202_v18  ;;  %v204_v24 = vld [vmem:[#allocation5 + $0x270] sm:$0xff]  ;;  %v123_v27 = vld [vmem:[#allocation2 + $0x20] sm:$0xff] }
  0x8f   :  { %1333 = vmatprep.subr.bf16.mxu1 %v1616_v50  ;;  %300 = vmatmul.mubr.f32.vlgmr.msra.gmra.mrb[0].mxu0 %v119_v41  ;;  %v1329_v23 = vpack.c.bf16 %v221_v21, %v220_v20  ;;  %v205_v25 = vld [vmem:[#allocation5 + $0x278] sm:$0xff]  ;;  %v515_v28 = vld [vmem:[#allocation7] sm:$0xff]  ;;  %v517_v30 = vld [vmem:[#allocation7 + $0x10] sm:$0xff] }
  0x90   :  { %1304 = vmatpush3.bf16.msra.mxu0 %v1303_v42  ;;  %439 = vmatprep.mubr.f32.mxu0 %v124_v49  ;;  %v1331_v26 = vpack.c.bf16 %v205_v25, %v204_v24  ;;  %v516_v29 = vld [vmem:[#allocation7 + $0x8] sm:$0xff]  ;;  %v518_v32 = vld [vmem:[#allocation7 + $0x18] sm:$0xff]  ;;  %v519_v34 = vld [vmem:[#allocation7 + $0x20] sm:$0xff] }
  0x91   :  { %370 = vmatmul.mubr.f32.vlgmr.msra.gmra.mrb[0].mxu1 %v121_v43  ;;  %1306 = vmatprep.subr.bf16.mxu0 %v1305_v45  ;;  %v1337_v31 = vpack.c.bf16 %v516_v29, %v515_v28  ;;  %v1340_v33 = vpack.c.bf16 %v518_v32, %v517_v30  ;;  %v520_v35 = vld [vmem:[#allocation7 + $0x28] sm:$0xff]  ;;  %v521_v37 = vld [vmem:[#allocation7 + $0x30] sm:$0xff]  ;;  %v522_v38 = vld [vmem:[#allocation7 + $0x38] sm:$0xff] }
  0x92   :  { %1335 = vmatpush3.bf16.msra.mxu1 %v1334_v53  ;;  %1094 = vmatprep.mubr.msk.f32.mxu1 %vm1617_vm0, %v1618_v60  ;;  %v1343_v36 = vpack.c.bf16 %v520_v35, %v519_v34  ;;  %v1346_v39 = vpack.c.bf16 %v522_v38, %v521_v37  ;;  %v523_v40 = vld [vmem:[#allocation7 + $0x40] sm:$0xff]  ;;  %v524_v41 = vld [vmem:[#allocation7 + $0x48] sm:$0xff]  ;;  %v525_v43 = vld [vmem:[#allocation7 + $0x50] sm:$0xff] }
  0x93   :  { %1336 = vmatprep.subr.bf16.mxu1 %v1616_v50  ;;  %v1349_v42 = vpack.c.bf16 %v524_v41, %v523_v40  ;;  %v526_v44 = vld [vmem:[#allocation7 + $0x58] sm:$0xff]  ;;  %v527_v46 = vld [vmem:[#allocation7 + $0x60] sm:$0xff]  ;;  %v528_v47 = vld [vmem:[#allocation7 + $0x68] sm:$0xff] }
  0x94   :  { %1308 = vmatpush3.bf16.msra.mxu0 %v1307_v54  ;;  %v1352_v45 = vpack.c.bf16 %v526_v44, %v525_v43  ;;  %v1355_v48 = vpack.c.bf16 %v528_v47, %v527_v46  ;;  %v529_v49 = vld [vmem:[#allocation7 + $0x70] sm:$0xff]  ;;  %v530_v51 = vld [vmem:[#allocation7 + $0x78] sm:$0xff]  ;;  %v608_v53 = vld [vmem:[#allocation8] sm:$0xff] }
  0x95   :  { %1310 = vmatprep.subr.bf16.mxu0 %v1309_v55  ;;  %1095 = vmatmul.mubr.msk.f32.vlgmr.msra.gmra.mrb[2].mxu1 %vm231_vm1, %v125_v61  ;;  %v1358_v52 = vpack.c.bf16 %v530_v51, %v529_v49  ;;  %v609_v54 = vld [vmem:[#allocation8 + $0x8] sm:$0xff]  ;;  %v610_v55 = vld [vmem:[#allocation8 + $0x10] sm:$0xff]  ;;  %v611_v57 = vld [vmem:[#allocation8 + $0x18] sm:$0xff] }
  0x96   :  { %1129 = vmatprep.mubr.msk.f32.mxu1 %vm1617_vm0, %v1618_v60  ;;  %1338 = vmatpush3.bf16.msra.mxu1 %v1337_v31  ;;  %v1361_v56 = vpack.c.bf16 %v609_v54, %v608_v53  ;;  %v1364_v58 = vpack.c.bf16 %v611_v57, %v610_v55  ;;  %v612_v59 = vld [vmem:[#allocation8 + $0x20] sm:$0xff]  ;;  %v613_v61 = vld [vmem:[#allocation8 + $0x28] sm:$0xff]  ;;  %v615_v0 = vld [vmem:[#allocation8 + $0x38] sm:$0xff] }
  0x97   :  { %1339 = vmatprep.subr.bf16.mxu1 %v1616_v50  ;;  %v616_v2 = vld [vmem:[#allocation8 + $0x40] sm:$0xff]  ;;  %v617_v3 = vld [vmem:[#allocation8 + $0x48] sm:$0xff]  ;;  %v619_v6 = vld [vmem:[#allocation8 + $0x58] sm:$0xff] }
  0x98   :  { %1312 = vmatpush3.bf16.msra.mxu0 %v1311_v62  ;;  %v1367_v62 = vpack.c.bf16 %v613_v61, %v612_v59  ;;  %v620_v8 = vld [vmem:[#allocation8 + $0x60] sm:$0xff]  ;;  %v621_v9 = vld [vmem:[#allocation8 + $0x68] sm:$0xff]  ;;  %v908_v12 = vld [vmem:[%s1839_s2] ss:$0 sm:$0xff] }
  0x99   :  { %1314 = vmatprep.subr.bf16.mxu0 %v1313_v63  ;;  %v614_v63 = vld [vmem:[#allocation8 + $0x30] sm:$0xff]  ;;  %v623_v28 = vld [vmem:[#allocation8 + $0x78] sm:$0xff]  ;;  %v702_v30 = vld [vmem:[#allocation10] sm:$0xff] }
  0x9a   :  { %1341 = vmatpush3.bf16.msra.mxu1 %v1340_v33  ;;  %v1370_v1 = vpack.c.bf16 %v615_v0, %v614_v63  ;;  %v703_v31 = vld [vmem:[#allocation10 + $0x8] sm:$0xff]  ;;  %v704_v32 = vld [vmem:[#allocation10 + $0x10] sm:$0xff]  ;;  %v705_v34 = vld [vmem:[#allocation10 + $0x18] sm:$0xff] }
  0x9b   :  { %1342 = vmatprep.subr.bf16.mxu1 %v1616_v50  ;;  %v1385_v33 = vpack.c.bf16 %v703_v31, %v702_v30  ;;  %v1388_v35 = vpack.c.bf16 %v705_v34, %v704_v32  ;;  %v707_v37 = vld [vmem:[#allocation10 + $0x28] sm:$0xff]  ;;  %v709_v40 = vld [vmem:[#allocation10 + $0x38] sm:$0xff]  ;;  %v796_v59 = vld [vmem:[#allocation11] sm:$0xff] }
  0x9c   :  { %1316 = vmatpush3.bf16.msra.mxu0 %v1315_v4  ;;  %v1373_v4 = vpack.c.bf16 %v617_v3, %v616_v2  ;;  %v711_v43 = vld [vmem:[#allocation10 + $0x48] sm:$0xff]  ;;  %v713_v46 = vld [vmem:[#allocation10 + $0x58] sm:$0xff]  ;;  %v800_v2 = vld [vmem:[#allocation11 + $0x20] sm:$0xff] }
  0x9d   :  { %1318 = vmatprep.subr.bf16.mxu0 %v1317_v5  ;;  %v618_v5 = vld [vmem:[#allocation8 + $0x50] sm:$0xff]  ;;  %v715_v49 = vld [vmem:[#allocation10 + $0x68] sm:$0xff]  ;;  %v717_v57 = vld [vmem:[#allocation10 + $0x78] sm:$0xff] }
  0x9e   :  { %1344 = vmatpush3.bf16.msra.mxu1 %v1343_v36  ;;  %v1376_v7 = vpack.c.bf16 %v619_v6, %v618_v5  ;;  %v706_v36 = vld [vmem:[#allocation10 + $0x20] sm:$0xff]  ;;  %v797_v61 = vld [vmem:[#allocation11 + $0x8] sm:$0xff]  ;;  %v799_v0 = vld [vmem:[#allocation11 + $0x18] sm:$0xff] }
  0x9f   :  { %1345 = vmatprep.subr.bf16.mxu1 %v1616_v50  ;;  %v1391_v38 = vpack.c.bf16 %v707_v37, %v706_v36  ;;  %v1409_v63 = vpack.c.bf16 %v797_v61, %v796_v59  ;;  %v801_v3 = vld [vmem:[#allocation11 + $0x28] sm:$0xff]  ;;  %v803_v5 = vld [vmem:[#allocation11 + $0x38] sm:$0xff] }
  0xa0   :  { %1320 = vmatpush3.bf16.msra.mxu0 %v1319_v10  ;;  %v1379_v10 = vpack.c.bf16 %v621_v9, %v620_v8  ;;  %v805_v8 = vld [vmem:[#allocation11 + $0x48] sm:$0xff] }
  0xa1   :  { %1322 = vmatprep.subr.bf16.mxu0 %v1321_v11 }
  0xa2   :  { %1347 = vmatpush3.bf16.msra.mxu1 %v1346_v39  ;;  %v708_v39 = vld [vmem:[#allocation10 + $0x30] sm:$0xff] }
  0xa3   :  { %1348 = vmatprep.subr.bf16.mxu1 %v1616_v50  ;;  %v1394_v41 = vpack.c.bf16 %v709_v40, %v708_v39 }
  0xa4   :  { %1324 = vmatpush3.bf16.msra.mxu0 %v1323_v16 }
  0xa5   :  { %1326 = vmatprep.subr.bf16.mxu0 %v1325_v17 }
  0xa6   :  { %1350 = vmatpush3.bf16.msra.mxu1 %v1349_v42  ;;  %v710_v42 = vld [vmem:[#allocation10 + $0x40] sm:$0xff] }
  0xa7   :  { %1351 = vmatprep.subr.bf16.mxu1 %v1616_v50  ;;  %v1397_v44 = vpack.c.bf16 %v711_v43, %v710_v42 }
  0xa8   :  { %1328 = vmatpush3.bf16.msra.mxu0 %v1327_v22 }
  0xa9   :  { %1330 = vmatprep.subr.bf16.mxu0 %v1329_v23 }
  0xaa   :  { %1353 = vmatpush3.bf16.msra.mxu1 %v1352_v45  ;;  %v712_v45 = vld [vmem:[#allocation10 + $0x50] sm:$0xff] }
  0xab   :  { %1354 = vmatprep.subr.bf16.mxu1 %v1616_v50  ;;  %v1400_v47 = vpack.c.bf16 %v713_v46, %v712_v45 }
  0xac   :  { %1332 = vmatpush3.bf16.msra.mxu0 %v1331_v26 }
  0xad   :  { %1360 = vmatprep.subr.bf16.mxu0 %v1616_v50 }
  0xae   :  { %1356 = vmatpush3.bf16.msra.mxu1 %v1355_v48  ;;  %v714_v48 = vld [vmem:[#allocation10 + $0x60] sm:$0xff] }
  0xaf   :  { %440 = vmatmul.mubr.f32.vlgmr.msra.gmra.mrb[2].mxu0 %v123_v27  ;;  %1357 = vmatprep.subr.bf16.mxu1 %v1616_v50  ;;  %v622_v27 = vld [vmem:[#allocation8 + $0x70] sm:$0xff]  ;;  %v1403_v51 = vpack.c.bf16 %v715_v49, %v714_v48 }
  0xb0   :  { %1164 = vmatprep.mubr.msk.f32.mxu0 %vm1617_vm0, %v1618_v60  ;;  %1362 = vmatpush3.bf16.msra.mxu0 %v1361_v56  ;;  %v1382_v29 = vpack.c.bf16 %v623_v28, %v622_v27  ;;  %v716_v56 = vld [vmem:[#allocation10 + $0x70] sm:$0xff]  ;;  %v913_v28 = vld [vmem:[%s1847_s10] ss:$0 sm:$0xff] }
  0xb1   :  { %1363 = vmatprep.subr.bf16.mxu0 %v1616_v50 }
  0xb2   :  { %1359 = vmatpush3.bf16.msra.mxu1 %v1358_v52  ;;  %v910_v52 = vld [vmem:[%s1841_s4] ss:$0 sm:$0xff] }
  0xb3   :  { %1384 = vmatprep.subr.bf16.mxu1 %v1616_v50 }
  0xb4   :  { %1365 = vmatpush3.bf16.msra.mxu0 %v1364_v58  ;;  %v1406_v58 = vpack.c.bf16 %v717_v57, %v716_v56 }
  0xb5   :  { %1366 = vmatprep.subr.bf16.mxu0 %v1616_v50 }
  0xb8   :  { %1368 = vmatpush3.bf16.msra.mxu0 %v1367_v62  ;;  %v798_v62 = vld [vmem:[#allocation11 + $0x10] sm:$0xff] }
  0xb9   :  { %1369 = vmatprep.subr.bf16.mxu0 %v1616_v50 }
  0xbc   :  { %1371 = vmatpush3.bf16.msra.mxu0 %v1370_v1  ;;  %v1412_v1 = vpack.c.bf16 %v799_v0, %v798_v62 }
  0xbd   :  { %1372 = vmatprep.subr.bf16.mxu0 %v1616_v50 }
  0xc0   :  { %1374 = vmatpush3.bf16.msra.mxu0 %v1373_v4  ;;  %v1415_v4 = vpack.c.bf16 %v801_v3, %v800_v2 }
  0xc1   :  { %1375 = vmatprep.subr.bf16.mxu0 %v1616_v50 }
  0xc4   :  { %1377 = vmatpush3.bf16.msra.mxu0 %v1376_v7  ;;  %v804_v7 = vld [vmem:[#allocation11 + $0x40] sm:$0xff] }
  0xc5   :  { %1378 = vmatprep.subr.bf16.mxu0 %v1616_v50  ;;  %v1421_v9 = vpack.c.bf16 %v805_v8, %v804_v7 }
  0xc8   :  { %1380 = vmatpush3.bf16.msra.mxu0 %v1379_v10  ;;  %v806_v10 = vld [vmem:[#allocation11 + $0x50] sm:$0xff] }
  0xc9   :  { %1381 = vmatprep.subr.bf16.mxu0 %v1616_v50 }
  0xcc   :  { %1383 = vmatpush3.bf16.msra.mxu0 %v1382_v29 }
  0xcd   :  { %1408 = vmatprep.subr.bf16.mxu0 %v1616_v50 }
 0x162   :  { %v946_v11 = vpop.f32.mrb[0].mxu0 }
 0x163   :  { %v947_v13 = vpop.f32.mrb[1].mxu0 }
 0x164   :  { %v981_v14 = vpop.f32.mrb[0].mxu1  ;;  %v948_v15 = vadd.f32 %v947_v13, %v946_v11  ;;  %v807_v11 = vld [vmem:[#allocation11 + $0x58] sm:$0xff]  ;;  %v808_v13 = vld [vmem:[#allocation11 + $0x60] sm:$0xff] }
 0x165   :  { %v982_v16 = vpop.f32.mrb[1].mxu1 }
 0x166   :  { %v983_v17 = vadd.f32 %v982_v16, %v981_v14  ;;  %v302_v18 = vadd.f32 %v948_v15, %v908_v12  ;;  %v1424_v12 = vpack.c.bf16 %v807_v11, %v806_v10  ;;  %v809_v14 = vld [vmem:[#allocation11 + $0x68] sm:$0xff]  ;;  %v911_v16 = vld [vmem:[%s1843_s6] ss:$0 sm:$0xff] }
 0x167   :  { %v1427_v15 = vpack.c.bf16 %v809_v14, %v808_v13 }
 0x168   :  { %v372_v19 = vadd.f32 %v983_v17, %v302_v18  ;;  %v511_v20 = vpop.f32.mrb[2].mxu1 }
 0x169   :  { %v1096_v21 = vpop.f32.mrb[3].mxu1 }
 0x16a   :  { %v811_v21 = vld [vmem:[#allocation11 + $0x78] sm:$0xff] }
 0x182   :  { %v1016_v22 = vpop.f32.mrb[2].mxu0 }
 0x183   :  { %v1017_v23 = vpop.f32.mrb[3].mxu0 }
 0x184   :  { %v1018_v24 = vadd.f32 %v1017_v23, %v1016_v22  ;;  %v912_v23 = vld [vmem:[%s1845_s8] ss:$0 sm:$0xff] }
 0x186   :  { %v442_v25 = vadd.f32 %v1018_v24, %v372_v19 }
 0x188   :  { %v512_v26 = vadd.f32 %v511_v20, %v442_v25  ;;  %v810_v20 = vld [vmem:[#allocation11 + $0x70] sm:$0xff] }
 0x189   :  { %v1430_v22 = vpack.c.bf16 %v811_v21, %v810_v20 }
 0x18a   :  { %1130 = vmatmul.mubr.f32.vlgmr.msra.gmra.mrb[4].mxu1 %v512_v26 }
 0x18b   :  { %1199 = vmatprep.mubr.msk.f32.mxu1 %vm1617_vm0, %v1618_v60  ;;  %1386 = vmatpush3.bf16.msra.mxu1 %v1385_v33 }
 0x18c   :  { %1387 = vmatprep.subr.bf16.mxu1 %v1616_v50 }
 0x18f   :  { %1389 = vmatpush3.bf16.msra.mxu1 %v1388_v35 }
 0x190   :  { %1390 = vmatprep.subr.bf16.mxu1 %v1616_v50 }
 0x193   :  { %1392 = vmatpush3.bf16.msra.mxu1 %v1391_v38 }
 0x194   :  { %1393 = vmatprep.subr.bf16.mxu1 %v1616_v50 }
 0x197   :  { %1395 = vmatpush3.bf16.msra.mxu1 %v1394_v41 }
 0x198   :  { %1396 = vmatprep.subr.bf16.mxu1 %v1616_v50 }
 0x19b   :  { %1398 = vmatpush3.bf16.msra.mxu1 %v1397_v44 }
 0x19c   :  { %1399 = vmatprep.subr.bf16.mxu1 %v1616_v50 }
 0x19f   :  { %1401 = vmatpush3.bf16.msra.mxu1 %v1400_v47 }
 0x1a0   :  { %1402 = vmatprep.subr.bf16.mxu1 %v1616_v50 }
 0x1a3   :  { %1404 = vmatpush3.bf16.msra.mxu1 %v1403_v51 }
 0x1a4   :  { %1405 = vmatprep.subr.bf16.mxu1 %v1616_v50 }
 0x1a7   :  { %1407 = vmatpush3.bf16.msra.mxu1 %v1406_v58 }
 0x25d   :  { %v604_v53 = vpop.f32.mrb[4].mxu1 }
 0x25e   :  { %v605_v54 = vadd.f32 %v910_v52, %v604_v53  ;;  %v1131_v55 = vpop.f32.mrb[5].mxu1 }
 0x260   :  { %1165 = vmatmul.mubr.f32.vlgmr.msra.gmra.mrb[4].mxu0 %v605_v54 }
 0x261   :  { %1234 = vmatprep.mubr.msk.f32.mxu0 %vm1617_vm0, %v1618_v60  ;;  %1410 = vmatpush3.bf16.msra.mxu0 %v1409_v63  ;;  %v802_v60 = vld [vmem:[#allocation11 + $0x30] sm:$0xff] }
 0x262   :  { %1411 = vmatprep.subr.bf16.mxu0 %v1616_v50  ;;  %v1418_v6 = vpack.c.bf16 %v803_v5, %v802_v60 }
 0x265   :  { %1413 = vmatpush3.bf16.msra.mxu0 %v1412_v1 }
 0x266   :  { %1414 = vmatprep.subr.bf16.mxu0 %v1616_v50 }
 0x269   :  { %1416 = vmatpush3.bf16.msra.mxu0 %v1415_v4 }
 0x26a   :  { %1417 = vmatprep.subr.bf16.mxu0 %v1616_v50 }
 0x26d   :  { %1419 = vmatpush3.bf16.msra.mxu0 %v1418_v6 }
 0x26e   :  { %1420 = vmatprep.subr.bf16.mxu0 %v1616_v50 }
 0x271   :  { %1422 = vmatpush3.bf16.msra.mxu0 %v1421_v9 }
 0x272   :  { %1423 = vmatprep.subr.bf16.mxu0 %v1616_v50 }
 0x275   :  { %1425 = vmatpush3.bf16.msra.mxu0 %v1424_v12 }
 0x276   :  { %1426 = vmatprep.subr.bf16.mxu0 %v1616_v50 }
 0x279   :  { %1428 = vmatpush3.bf16.msra.mxu0 %v1427_v15 }
 0x27a   :  { %1429 = vmatprep.subr.bf16.mxu0 %v1616_v50 }
 0x27d   :  { %1431 = vmatpush3.bf16.msra.mxu0 %v1430_v22 }
 0x333   :  { %v697_v17 = vpop.f32.mrb[4].mxu0 }
 0x334   :  { %v698_v18 = vadd.f32 %v911_v16, %v697_v17  ;;  %v1166_v19 = vpop.f32.mrb[5].mxu0 }
 0x336   :  { %1200 = vmatmul.mubr.f32.vlgmr.msra.gmra.mrb[6].mxu1 %v698_v18  ;;  %v701_v25 = vadd.f32 %v698_v18, %v605_v54 }
 0x409   :  { %v791_v24 = vpop.f32.mrb[6].mxu1 }
 0x40a   :  { %v792_v26 = vadd.f32 %v912_v23, %v791_v24  ;;  %v1201_v50 = vpop.f32.mrb[7].mxu1 }
 0x40c   :  { %v795_v27 = vadd.f32 %v792_v26, %v701_v25 }
 0x40e   :  { %1235 = vmatmul.mubr.f32.vlgmr.msra.gmra.mrb[6].mxu0 %v795_v27 }
 0x4e1   :  { %v885_v29 = vpop.f32.mrb[6].mxu0 }
 0x4e2   :  { %v886_v30 = vadd.f32 %v913_v28, %v885_v29  ;;  %v1236_v31 = vpop.f32.mrb[7].mxu0 }
 0x4e4   :  { %889 = vst [vmem:[#allocation13] sm:$0xff] %v886_v30 }
 0x4e5   :  { %1587 = shalt.err (!%p1584_p10)
}
 0x4e6   :  { %s1588_s3 = scalar_lea.hbm %s1848_s11, 128 }
 0x4e7   :  { %p1589_p11 = scmp.ne.s32.totalorder %s1848_s11, %s1588_s3  ;;  %p1592_p12 = scmp.lt.u32.totalorder %s1588_s3, %s1848_s11 }
 0x4e9   :  { %p1594_p13 = pnand %p1592_p12, %p1589_p11 }
 0x4eb   :  { %1597 = shalt.err (!%p1594_p13)
}
 0x4ec   :  { %899 = dma.vmem_to_hbm [thread:$0]  %s897_s13, 128, %s1848_s11, [#allocation4]  }
 0x4ed   :  { %1606 = dma.done.wait [#allocation4], 128  }
 0x4ee   :  { %1607 = vsyncadd [#allocation4], 4294967168 }
 0x4ef   :  { %903 = vsyncpa [#allocation3], 1 }
 0x4f0   :  { %904 = vsyncpa [#allocation6], 1 }
 0x4f1   :  { %905 = vsyncpa [#allocation9], 1 }
 0x4f2   :  { %906 = vsyncpa [#allocation12], 1 }
 0x4f3   :  { %907 = vsyncpa [#allocation4], 1 }

</bundles_post_ra>
